<compile_context>
chip_gen: v5e
topology: v5e:2x2
jax: 0.10.0
libtpu: 0.0.40
codegen_flags: <defaults>
</compile_context>

<pallas_src>
import math

import jax
import jax.numpy as jnp
from jax.experimental import pallas as pl
from jax.experimental.pallas import tpu as pltpu

_LANE = 128
_TARGET_BLOCK_BYTES = 2 * 1024 * 1024  # ~2 MiB blocks: >=85% of HBM roofline


def _sign_kernel(x_ref, o_ref):
    x = x_ref[...]
    one = jnp.ones((), dtype=x.dtype)
    # (x > 0) * 2 - 1  ==  +1 where x > 0, else -1 (x == 0 and NaN -> -1).
    o_ref[...] = jnp.where(x > 0, one, -one)


def _round_up(v: int, m: int) -> int:
    return ((v + m - 1) // m) * m


def _sublane_multiple(itemsize: int) -> int:
    # f32/i32 -> 8, bf16/f16 -> 16, int8/fp8 -> 32 (packed sublanes).
    return max(8, 32 // itemsize)


def _choose_block(batch: int, rows: int, cols: int, itemsize: int, sublane: int):
    """Pick a (tile_b, tile_r, tile_c) block of ~_TARGET_BLOCK_BYTES.

    VMEM accounting uses lane/sublane-padded sizes so narrow last dims do not
    silently blow up the real block footprint.
    """
    budget = max(_TARGET_BLOCK_BYTES // itemsize, sublane * _LANE)  # elements

    # Lane (last) dim: keep the full dim when a minimum-height block fits,
    # otherwise tile in 128-lane multiples (ragged tail is masked by Pallas).
    if _round_up(cols, _LANE) * sublane <= budget:
        tile_c = cols
    else:
        tile_c = max(_LANE, ((budget // sublane) // _LANE) * _LANE)
    pc = _round_up(tile_c, _LANE)

    # Sublane (second-to-last) dim: full dim or a multiple of the packed
    # sublane count (ragged tail masked).
    max_r = max(1, budget // pc)
    if max_r >= rows:
        tile_r = rows
    else:
        tile_r = max(sublane, (max_r // sublane) * sublane)
    pr = _round_up(tile_r, sublane)

    # Leading (batch) dim: unconstrained by the (8,128) rule.
    tile_b = max(1, min(batch, budget // (pr * pc)))
    return tile_b, tile_r, tile_c


def sign5(x: jax.Array, *, donate: bool = False) -> jax.Array:
    """Elementwise mySign forward as a Pallas TPU kernel."""
    orig_shape = x.shape
    if x.size == 0:
        return x

    # Normalize to 3-D (batch, rows, cols) keeping the original last two dims
    # so the reshape only collapses/adds leading dims (layout-free).
    if x.ndim >= 2:
        rows, cols = int(orig_shape[-2]), int(orig_shape[-1])
        batch = int(math.prod(orig_shape[:-2])) if x.ndim > 2 else 1
    elif x.ndim == 1:
        batch, rows, cols = 1, 1, int(orig_shape[0])
    else:  # scalar
        batch, rows, cols = 1, 1, 1
    x3 = x.reshape(batch, rows, cols)

    itemsize = jnp.dtype(x.dtype).itemsize
    sublane = _sublane_multiple(itemsize)
    tile_b, tile_r, tile_c = _choose_block(batch, rows, cols, itemsize, sublane)

    # Explicit scoped-VMEM limit: ~6x the (padded) block covers the 2-in +
    # 2-out pipeline buffers plus Mosaic scratch; clamp to a range that is
    # safe on every generation (v7x physical VMEM is 64 MiB).
    pr = _round_up(tile_r, sublane)
    pc = _round_up(tile_c, _LANE)
    block_vmem = tile_b * pr * pc * itemsize
    vmem_limit = int(min(max(16 * 1024 * 1024, 6 * block_vmem), 48 * 1024 * 1024))

    grid = (pl.cdiv(batch, tile_b), pl.cdiv(rows, tile_r), pl.cdiv(cols, tile_c))
    spec = pl.BlockSpec((tile_b, tile_r, tile_c), lambda b, r, c: (b, r, c))

    extra = {}
    if donate:
        # Write the result in place when the caller donates x (saves an HBM
        # output allocation; DMA traffic is unchanged).
        extra["input_output_aliases"] = {0: 0}

    out3 = pl.pallas_call(
        _sign_kernel,
        out_shape=jax.ShapeDtypeStruct((batch, rows, cols), x.dtype),
        grid_spec=pltpu.PrefetchScalarGridSpec(
            num_scalar_prefetch=0,
            grid=grid,
            in_specs=[spec],
            out_specs=spec,
        ),
        compiler_params=pltpu.CompilerParams(
            dimension_semantics=("parallel", "parallel", "parallel"),
            vmem_limit_bytes=vmem_limit,
        ),
        **extra,
    )(x3)
    return out3.reshape(orig_shape)


def _ref_sign(x: jax.Array) -> jax.Array:
    one = jnp.ones((), dtype=x.dtype)
    return jnp.where(x > 0, one, -one)


if __name__ == "__main__":
    # Main shape consistent with a CIFAR/MNIST-style conv pipeline (NCHW).
    key = jax.random.PRNGKey(0)
    x = jax.random.normal(key, (2, 4, 16, 16), dtype=jnp.float32)
    # Lock the x == 0 -> -1 and NaN -> -1 semantics of (x > 0)*2 - 1.
    x = x.at[0, 0, 0, 0].set(0.0).at[0, 0, 0, 1].set(jnp.nan)

    y = jax.block_until_ready(sign5(x))
    ref = _ref_sign(x)
    assert y.shape == x.shape and y.dtype == x.dtype
    assert bool(jnp.all(y == ref))
    assert float(y[0, 0, 0, 0]) == -1.0 and float(y[0, 0, 0, 1]) == -1.0

    # Lane-dense last dim + narrow dtype (bf16, 16-row packed sublanes).
    x2 = jax.random.normal(jax.random.PRNGKey(1), (4, 8, 256), dtype=jnp.bfloat16)
    y2 = jax.block_until_ready(sign5(x2))
    assert bool(jnp.all(y2 == _ref_sign(x2)))

    # Multi-step grid (batch-tiled ~1.5 MiB blocks).
    x3 = jax.random.normal(jax.random.PRNGKey(2), (4, 768, 512), dtype=jnp.float32)
    y3 = jax.block_until_ready(sign5(x3))
    assert bool(jnp.all(y3 == _ref_sign(x3)))

    # 1-D input with a non-128-friendly length (no pad/slice round trip).
    x4 = jax.random.normal(jax.random.PRNGKey(3), (1000,), dtype=jnp.float32)
    y4 = jax.block_until_ready(sign5(x4))
    assert bool(jnp.all(y4 == _ref_sign(x4)))

    print("KERNEL_OK")
</pallas_src>

<mosaic_0001>
module attributes {stable_mosaic.version = 11 : i64} {
  func.func @_sign_kernel(%arg0: i32, %arg1: i32, %arg2: i32, %arg3: memref<8x16x16xf32, #tpu.memory_space<vmem>>, %arg4: memref<8x16x16xf32, #tpu.memory_space<vmem>>) attributes {dimension_semantics = [#tpu.dimension_semantics<parallel>, #tpu.dimension_semantics<parallel>, #tpu.dimension_semantics<parallel>], iteration_bounds = array<i64: 1, 1, 1>, scalar_prefetch = 0 : i64, scratch_operands = 0 : i64, tpu.core_type = #tpu.core_type<tc>, window_params = [{transform_indices = @transform_0, window_bounds = array<i64: 8, 16, 16>}, {transform_indices = @transform_1, window_bounds = array<i64: 8, 16, 16>}]} {
    %c0 = arith.constant 0 : index
    %c0_0 = arith.constant 0 : index
    %c0_1 = arith.constant 0 : index
    %0 = vector.load %arg3[%c0, %c0_0, %c0_1] : memref<8x16x16xf32, #tpu.memory_space<vmem>>, vector<8x16x16xf32>
    %cst = arith.constant 0.000000e+00 : f32
    %1 = vector.broadcast %cst : f32 to vector<8x16x16xf32>
    %2 = arith.cmpf ogt, %0, %1 : vector<8x16x16xf32>
    %cst_2 = arith.constant 0.000000e+00 : f32
    %cst_3 = arith.constant 1.000000e+00 : f32
    %3 = arith.subf %cst_2, %cst_3 : f32
    %cst_4 = arith.constant 1.000000e+00 : f32
    %4 = vector.broadcast %cst_4 : f32 to vector<8x16x16xf32>
    %5 = vector.broadcast %3 : f32 to vector<8x16x16xf32>
    %6 = arith.select %2, %4, %5 : vector<8x16x16xi1>, vector<8x16x16xf32>
    %c0_5 = arith.constant 0 : index
    %c0_6 = arith.constant 0 : index
    %c0_7 = arith.constant 0 : index
    %7 = vector.load %arg4[%c0_5, %c0_6, %c0_7] : memref<8x16x16xf32, #tpu.memory_space<vmem>>, vector<8x16x16xf32>
    tpu.vector_store %arg4[%c0_5, %c0_6, %c0_7], %6 {strides = array<i32>} : memref<8x16x16xf32, #tpu.memory_space<vmem>>, vector<8x16x16xf32>,
    return
  }
  func.func @transform_0(%arg0: i32, %arg1: i32, %arg2: i32) -> (i32, i32, i32) {
    %c0_i32 = arith.constant 0 : i32
    return %arg0, %arg1, %arg2 : i32, i32, i32
  }
  func.func @transform_1(%arg0: i32, %arg1: i32, %arg2: i32) -> (i32, i32, i32) {
    %c0_i32 = arith.constant 0 : i32
    return %arg0, %arg1, %arg2 : i32, i32, i32
  }
}

</mosaic_0001>

<bundles_post_ra>
// kernel: tpu_custom_call.1
= control target key start
LH: loop header
LB: loop body
LE: loop exit
PB: predicated region body
PF: predicated region fallthrough
CT: control target
= control target key end

     0   :  { %6 = vsyncpa [#allocation3], 0  ;;  %s209_s0 = inlined_call_operand.hbm [shape: f32[8,16,16], index: 0, kind: input, shape index: {}]   ;;  %s210_s1 = inlined_call_operand.hbm [shape: f32[8,16,16], index: 1, kind: output, shape index: {}]  }
   0x1   :  { %7 = vsyncpa [#allocation4], 0  ;;  %s12_s8 = sshll.u32 %s209_s0, 4  ;;  %s166_s9 = smov [#allocation2]   ;;  %s13_s8 = int_to_ptr.hbm [resolvable:$true] %s12_s8 }
   0x2   :  { %s14_s10 = sshll.u32 %s166_s9, 4  ;;  %s167_s11 = smov 128   ;;  %s15_s10 = int_to_ptr.vmem [resolvable:$true] %s14_s10 }
   0x3   :  { %s168_s12 = smov 8  }
   0x4   :  { %20 = dma.hbm_to_vmem [thread:$0]  %s13_s8, 2048, %s15_s10, [#allocation3], %s167_s11, %s167_s11, %s168_s12  }
   0x5   :  { %162 = dma.done.wait [#allocation3], 2048  }
   0x6   :  { %163 = vsyncadd [#allocation3], 4294965248  ;;  %v25_v0 = vld [vmem:[#allocation2] sm:$0xff]  ;;  %vm73_vm0 = vcmask 130048   ;;  %v26_v1 = vld [vmem:[#allocation2 + $0x8] sm:$0xff]  ;;  %v169_v6 = vmov -1.0  }
   0x7   :  { %v27_v2 = vld [vmem:[#allocation2 + $0x10] sm:$0xff]  ;;  %vm41_vm1 = vcmp.gt.f32.partialorder %v25_v0, 0.0  ;;  %vm42_vm2 = vcmp.gt.f32.partialorder %v26_v1, 0.0  ;;  %v28_v3 = vld [vmem:[#allocation2 + $0x18] sm:$0xff]  ;;  %v29_v4 = vld [vmem:[#allocation2 + $0x20] sm:$0xff]  ;;  %s170_s0 = smov [#allocation5]  }
   0x8   :  { %vm43_vm3 = vcmp.gt.f32.partialorder %v27_v2, 0.0  ;;  %v30_v5 = vld [vmem:[#allocation2 + $0x28] sm:$0xff]  ;;  %v57_v7 = vsel %vm41_vm1, 1.0, %v169_v6  ;;  %v58_v8 = vsel %vm42_vm2, 1.0, %v169_v6  ;;  %vm44_vm4 = vcmp.gt.f32.partialorder %v28_v3, 0.0  ;;  %v31_v10 = vld [vmem:[#allocation2 + $0x30] sm:$0xff] }
   0x9   :  { %v59_v9 = vsel %vm43_vm3, 1.0, %v169_v6  ;;  %v32_v11 = vld [vmem:[#allocation2 + $0x38] sm:$0xff]  ;;  %74 = vst.msk [vmem:[#allocation5] sm:$0xff] %vm73_vm0, %v57_v7  ;;  %v60_v12 = vsel %vm44_vm4, 1.0, %v169_v6  ;;  %vm45_vm5 = vcmp.gt.f32.partialorder %v29_v4, 0.0  ;;  %vm46_vm6 = vcmp.gt.f32.partialorder %v30_v5, 0.0 }
   0xa   :  { %vm47_vm7 = vcmp.gt.f32.partialorder %v31_v10, 0.0  ;;  %v33_v13 = vld [vmem:[#allocation2 + $0x40] sm:$0xff]  ;;  %75 = vst.msk [vmem:[#allocation5 + $0x8] sm:$0xff] %vm73_vm0, %v58_v8  ;;  %v61_v14 = vsel %vm45_vm5, 1.0, %v169_v6  ;;  %vm48_vm8 = vcmp.gt.f32.partialorder %v32_v11, 0.0  ;;  %v34_v15 = vld [vmem:[#allocation2 + $0x48] sm:$0xff] }
   0xb   :  { %76 = vst.msk [vmem:[#allocation5 + $0x10] sm:$0xff] %vm73_vm0, %v59_v9  ;;  %v62_v16 = vsel %vm46_vm6, 1.0, %v169_v6  ;;  %vm49_vm9 = vcmp.gt.f32.partialorder %v33_v13, 0.0  ;;  %v35_v17 = vld [vmem:[#allocation2 + $0x50] sm:$0xff]  ;;  %v36_v18 = vld [vmem:[#allocation2 + $0x58] sm:$0xff]  ;;  %v63_v19 = vsel %vm47_vm7, 1.0, %v169_v6 }
   0xc   :  { %77 = vst.msk [vmem:[#allocation5 + $0x18] sm:$0xff] %vm73_vm0, %v60_v12  ;;  %vm50_vm10 = vcmp.gt.f32.partialorder %v34_v15, 0.0  ;;  %v37_v20 = vld [vmem:[#allocation2 + $0x60] sm:$0xff]  ;;  %v64_v21 = vsel %vm48_vm8, 1.0, %v169_v6  ;;  %vm51_vm11 = vcmp.gt.f32.partialorder %v35_v17, 0.0  ;;  %v38_v22 = vld [vmem:[#allocation2 + $0x68] sm:$0xff] }
   0xd   :  { %78 = vst.msk [vmem:[#allocation5 + $0x20] sm:$0xff] %vm73_vm0, %v61_v14  ;;  %v65_v23 = vsel %vm49_vm9, 1.0, %v169_v6  ;;  %vm52_vm12 = vcmp.gt.f32.partialorder %v36_v18, 0.0  ;;  %v39_v24 = vld [vmem:[#allocation2 + $0x70] sm:$0xff]  ;;  %v66_v25 = vsel %vm50_vm10, 1.0, %v169_v6  ;;  %vm53_vm13 = vcmp.gt.f32.partialorder %v37_v20, 0.0 }
   0xe   :  { %79 = vst.msk [vmem:[#allocation5 + $0x28] sm:$0xff] %vm73_vm0, %v62_v16  ;;  %v40_v26 = vld [vmem:[#allocation2 + $0x78] sm:$0xff]  ;;  %v67_v27 = vsel %vm51_vm11, 1.0, %v169_v6  ;;  %vm54_vm14 = vcmp.gt.f32.partialorder %v38_v22, 0.0  ;;  %v68_v28 = vsel %vm52_vm12, 1.0, %v169_v6  ;;  %vm55_vm15 = vcmp.gt.f32.partialorder %v39_v24, 0.0 }
   0xf   :  { %80 = vst.msk [vmem:[#allocation5 + $0x30] sm:$0xff] %vm73_vm0, %v63_v19  ;;  %v69_v29 = vsel %vm53_vm13, 1.0, %v169_v6  ;;  %vm56_vm1 = vcmp.gt.f32.partialorder %v40_v26, 0.0  ;;  %v70_v30 = vsel %vm54_vm14, 1.0, %v169_v6  ;;  %s94_s13 = sshll.u32 %s170_s0, 4  ;;  %s96_s16 = sshll.u32 %s210_s1, 4  ;;  %s95_s13 = int_to_ptr.vmem [resolvable:$true] %s94_s13  ;;  %s97_s16 = int_to_ptr.hbm [resolvable:$true] %s96_s16 }
  0x10   :  { %81 = vst.msk [vmem:[#allocation5 + $0x38] sm:$0xff] %vm73_vm0, %v64_v21  ;;  %v71_v31 = vsel %vm55_vm15, 1.0, %v169_v6  ;;  %v72_v32 = vsel %vm56_vm1, 1.0, %v169_v6 }
  0x11   :  { %82 = vst.msk [vmem:[#allocation5 + $0x40] sm:$0xff] %vm73_vm0, %v65_v23 }
  0x12   :  { %83 = vst.msk [vmem:[#allocation5 + $0x48] sm:$0xff] %vm73_vm0, %v66_v25 }
  0x13   :  { %84 = vst.msk [vmem:[#allocation5 + $0x50] sm:$0xff] %vm73_vm0, %v67_v27 }
  0x14   :  { %85 = vst.msk [vmem:[#allocation5 + $0x58] sm:$0xff] %vm73_vm0, %v68_v28 }
  0x15   :  { %86 = vst.msk [vmem:[#allocation5 + $0x60] sm:$0xff] %vm73_vm0, %v69_v29 }
  0x16   :  { %87 = vst.msk [vmem:[#allocation5 + $0x68] sm:$0xff] %vm73_vm0, %v70_v30 }
  0x17   :  { %88 = vst.msk [vmem:[#allocation5 + $0x70] sm:$0xff] %vm73_vm0, %v71_v31 }
  0x18   :  { %89 = vst.msk [vmem:[#allocation5 + $0x78] sm:$0xff] %vm73_vm0, %v72_v32 }
  0x19   :  { %102 = dma.vmem_to_hbm [thread:$0]  %s95_s13, 2048, %s97_s16, [#allocation4], %s167_s11, %s167_s11, %s168_s12  }
  0x1a   :  { %164 = dma.done.wait [#allocation4], 2048  }
  0x1b   :  { %165 = vsyncadd [#allocation4], 4294965248 }
  0x1c   :  { %107 = vsyncpa [#allocation3], 1 }
  0x1d   :  { %108 = vsyncpa [#allocation4], 1 }

</bundles_post_ra>
